<compile_context>
chip_gen: v6e
topology: v6e:2x2x1
jax: 0.10.0
libtpu: 0.0.40
codegen_flags: <defaults>
</compile_context>

<pallas_src>
import functools

import numpy as np
import jax
import jax.numpy as jnp
from jax.experimental import pallas as pl
from jax.experimental.pallas import tpu as pltpu

B_ANCHORS = 2
NUM_CLASSES = 3
NUM_FEATURES = B_ANCHORS * (5 + NUM_CLASSES)   # 16
_BN_EPS = 1e-5


# ----------------------------------------------------------------------------
# Tile selection
# ----------------------------------------------------------------------------
def _ceil_to(a, m):
    return (a + m - 1) // m * m


def _n_lane_cap():
    # 256-wide MXU on v6e / v7x; 128-wide on v5e and older.
    try:
        kind = jax.devices()[0].device_kind.lower()
        if any(t in kind for t in ("v2", "v3", "v4", "v5")):
            return 128
    except Exception:
        pass
    return 256


_N_CAP = _n_lane_cap()
_K_CAP = 2048
_M_CAP = 256


def _pick_m(M):
    Mt = min(_ceil_to(M, 16), _M_CAP)     # bf16-friendly sublane multiple
    return Mt, _ceil_to(M, Mt)


def _pick_n(N):
    Np = _ceil_to(N, 128)
    Nt = _N_CAP if Np % _N_CAP == 0 else 128
    return Nt, Np


def _pick_k(K):
    Kp = _ceil_to(K, 128)
    if Kp <= _K_CAP:
        return Kp, Kp                      # single K step
    best, t = 128, 256
    while t <= _K_CAP:
        if Kp % t == 0:
            best = t
        t += 128
    return best, Kp


# ----------------------------------------------------------------------------
# Fused matmul + BN-fold + activation (+ optional residual) Pallas kernels
#   Y = act((patches @ W) * scale + shift [+ res])   -- bf16 in, bf16 out, f32 acc
# ----------------------------------------------------------------------------
def _epilogue(acc, ss_ref, res, slope, o_ref):
    # ss_ref row 0 = per-output-channel scale, row 1 = shift (f32)
    y = acc * ss_ref[0:1, :] + ss_ref[1:2, :]
    if res is not None:
        y = y + res                                  # bf16 res promotes to f32
    # slope: 0.0 -> ReLU, 0.1 -> LeakyReLU(0.1), 1.0 -> identity
    if slope != 1.0:
        y = jnp.where(y >= 0, y, slope * y)
    o_ref[...] = y.astype(o_ref.dtype)


def _mm_single(x_ref, w_ref, ss_ref, o_ref, *, slope):
    acc = jnp.dot(x_ref[...], w_ref[...], preferred_element_type=jnp.float32)
    _epilogue(acc, ss_ref, None, slope, o_ref)


def _mm_single_res(x_ref, w_ref, ss_ref, r_ref, o_ref, *, slope):
    acc = jnp.dot(x_ref[...], w_ref[...], preferred_element_type=jnp.float32)
    _epilogue(acc, ss_ref, r_ref[...], slope, o_ref)


def _mm_multi(x_ref, w_ref, ss_ref, o_ref, acc_ref, *, slope):
    k = pl.program_id(2)

    @pl.when(k == 0)
    def _():
        acc_ref[...] = jnp.zeros_like(acc_ref)

    acc_ref[...] += jnp.dot(x_ref[...], w_ref[...],
                            preferred_element_type=jnp.float32)

    @pl.when(k == pl.num_programs(2) - 1)
    def _():
        _epilogue(acc_ref[...], ss_ref, None, slope, o_ref)


def _mm_multi_res(x_ref, w_ref, ss_ref, r_ref, o_ref, acc_ref, *, slope):
    k = pl.program_id(2)

    @pl.when(k == 0)
    def _():
        acc_ref[...] = jnp.zeros_like(acc_ref)

    acc_ref[...] += jnp.dot(x_ref[...], w_ref[...],
                            preferred_element_type=jnp.float32)

    @pl.when(k == pl.num_programs(2) - 1)
    def _():
        _epilogue(acc_ref[...], ss_ref, r_ref[...], slope, o_ref)


@functools.lru_cache(maxsize=None)
def _build_fused(Mp, Kp, Np, Mt, Kt, Nt, slope, has_res):
    single_k = (Kp == Kt)
    if single_k:
        grid = (Mp // Mt, Np // Nt)
        x_map = lambda i, j: (i, 0)
        w_map = lambda i, j: (0, j)
        s_map = lambda i, j: (0, j)
        o_map = lambda i, j: (i, j)
        dims = ("parallel", "parallel")
        scratch = []
        kern = _mm_single_res if has_res else _mm_single
    else:
        grid = (Mp // Mt, Np // Nt, Kp // Kt)
        x_map = lambda i, j, k: (i, k)
        w_map = lambda i, j, k: (k, j)
        s_map = lambda i, j, k: (0, j)
        o_map = lambda i, j, k: (i, j)
        dims = ("parallel", "parallel", "arbitrary")
        scratch = [pltpu.VMEM((Mt, Nt), jnp.float32)]
        kern = _mm_multi_res if has_res else _mm_multi

    in_specs = [
        pl.BlockSpec((Mt, Kt), x_map),   # bf16 patches
        pl.BlockSpec((Kt, Nt), w_map),   # bf16 weights (pre-padded)
        pl.BlockSpec((8, Nt), s_map),    # f32 scale/shift slab
    ]
    if has_res:
        in_specs.append(pl.BlockSpec((Mt, Nt), o_map))   # bf16 residual

    return pl.pallas_call(
        functools.partial(kern, slope=slope),
        out_shape=jax.ShapeDtypeStruct((Mp, Np), jnp.bfloat16),
        grid_spec=pltpu.PrefetchScalarGridSpec(
            num_scalar_prefetch=0,
            grid=grid,
            in_specs=in_specs,
            out_specs=pl.BlockSpec((Mt, Nt), o_map),
            scratch_shapes=scratch,
        ),
        compiler_params=pltpu.CompilerParams(dimension_semantics=dims),
    )


def fused_matmul(patches, wq, ss, slope, M, K, N, residual=None):
    """Y[:M,:N] = act((patches @ wq) * scale + shift [+ residual]) via Pallas (bf16 out)."""
    Kp, Np = wq.shape
    Mt, Mp = _pick_m(M)
    Nt, _ = _pick_n(N)
    Kt, _ = _pick_k(K)
    assert Kp % Kt == 0 and Np % Nt == 0
    # keep both TensorCores busy on dual-TC chips when the grid would be (1,1)
    if Mp // Mt == 1 and Np // Nt == 1:
        if Nt > 128:
            Nt = 128                       # split N
        elif Mp >= 32 and Mp % 32 == 0:
            Mt = Mp // 2                   # N can't be split -> split M

    x = patches.astype(jnp.bfloat16)
    if (Mp - M) or (Kp - K):
        x = jnp.pad(x, ((0, Mp - M), (0, Kp - K)))
    args = [x, wq, ss]
    if residual is not None:
        r = residual.astype(jnp.bfloat16)
        if (Mp - M) or (Np - N):
            r = jnp.pad(r, ((0, Mp - M), (0, Np - N)))
        args.append(r)

    fn = _build_fused(Mp, Kp, Np, Mt, Kt, Nt, float(slope), residual is not None)
    out = fn(*args)
    if (Mp - M) or (Np - N):
        out = out[:M, :N]
    return out


# ----------------------------------------------------------------------------
# Conv (im2col, bf16 patches) + BN + activation wrapper
# ----------------------------------------------------------------------------
def im2col(x, kh, kw, stride, padding):
    """x: (N,H,W,C) -> bf16 patches (N*Ho*Wo, kh*kw*C) ordered (dy, dx, C)."""
    N, H, W, C = x.shape
    Ho = (H + 2 * padding - kh) // stride + 1
    Wo = (W + 2 * padding - kw) // stride + 1
    x = x.astype(jnp.bfloat16)
    if padding > 0:
        x = jnp.pad(x, ((0, 0), (padding, padding), (padding, padding), (0, 0)))
    if kh == 1 and kw == 1:
        patches = x if stride == 1 else x[:, ::stride, ::stride, :]
    else:
        cols = []
        for dy in range(kh):
            for dx in range(kw):
                cols.append(x[:, dy:dy + (Ho - 1) * stride + 1:stride,
                              dx:dx + (Wo - 1) * stride + 1:stride, :])
        patches = jnp.concatenate(cols, axis=-1)
    return patches.reshape(N * Ho * Wo, kh * kw * C), (N, Ho, Wo)


def conv_bn_act(x, p, stride, padding, slope, residual=None):
    """ConvUnit / backbone conv: conv2d + (inference) BN + leaky/relu/identity."""
    kh, kw, cin, cout = p["kh"], p["kw"], p["cin"], p["cout"]
    patches, (N, Ho, Wo) = im2col(x, kh, kw, stride, padding)
    res2 = residual.reshape(N * Ho * Wo, cout) if residual is not None else None
    out = fused_matmul(patches, p["wq"], p["ss"], slope,
                       N * Ho * Wo, kh * kw * cin, cout, res2)
    return out.reshape(N, Ho, Wo, cout)


# ----------------------------------------------------------------------------
# Shared helper: full-lane-width bf16 boundary mask for an implicit 3x3/pad=1 conv.
# mask[:, t*C:(t+1)*C] = 1 iff output row m may read tap t (zero at image borders).
# ----------------------------------------------------------------------------
@functools.lru_cache(maxsize=None)
def _tap_mask(N, H, W, C):
    M = N * H * W
    mask = np.zeros((M, 9 * C), np.float32)
    _, h_, w_ = np.meshgrid(np.arange(N), np.arange(H), np.arange(W), indexing="ij")
    h = h_.reshape(-1)
    w = w_.reshape(-1)
    for dy in range(3):
        for dx in range(3):
            t = dy * 3 + dx
            valid = ((h + dy - 1 >= 0) & (h + dy - 1 < H) &
                     (w + dx - 1 >= 0) & (w + dx - 1 < W)).astype(np.float32)
            mask[:, t * C:(t + 1) * C] = valid[:, None]
    return jnp.asarray(mask, jnp.bfloat16)


# ----------------------------------------------------------------------------
# Stacked identity-bottleneck kernel: all non-downsample blocks of one ResNet
# layer in a single pallas_call.  Grid iterates over blocks; the f32 activation
# stays resident in a VMEM carry; the 3x3 conv is ONE K-concatenated matmul fed
# from a masked bf16 tap buffer.
# ----------------------------------------------------------------------------
def _stacked_bottleneck_kernel(x_ref, mask_ref, w1_ref, ss1_ref, w2_ref, ss2_ref,
                               w3_ref, ss3_ref, o_ref,
                               carry_ref, zbuf_ref, tap_ref, *, W, M, pad, Pp):
    b = pl.program_id(0)

    @pl.when(b == 0)
    def _():
        carry_ref[...] = x_ref[...].astype(jnp.float32)
        zbuf_ref[...] = jnp.zeros_like(zbuf_ref)      # zero halo rows once

    x_bf = carry_ref[...].astype(jnp.bfloat16)        # (M, C4) bf16

    # ---- conv1: 1x1 + BN + ReLU ----
    y1 = jnp.dot(x_bf, w1_ref[0], preferred_element_type=jnp.float32)
    y1 = jnp.maximum(y1 * ss1_ref[0, 0:1, :] + ss1_ref[0, 1:2, :], 0.0)

    # ---- conv2: 3x3, pad=1, stride=1 (masked tap buffer + single matmul) ----
    zbuf_ref[pl.ds(pad, M), :] = y1.astype(jnp.bfloat16)
    for dy in range(3):
        for dx in range(3):
            t = dy * 3 + dx
            off = (dy - 1) * W + (dx - 1)
            tap_ref[:, t * Pp:(t + 1) * Pp] = (
                zbuf_ref[pl.ds(pad + off, M), :]
                * mask_ref[:, t * Pp:(t + 1) * Pp])
    y2 = jnp.dot(tap_ref[...], w2_ref[0], preferred_element_type=jnp.float32)
    y2 = jnp.maximum(y2 * ss2_ref[0, 0:1, :] + ss2_ref[0, 1:2, :], 0.0)

    # ---- conv3: 1x1 + BN + residual add + ReLU ----
    y3 = jnp.dot(y2.astype(jnp.bfloat16), w3_ref[0],
                 preferred_element_type=jnp.float32)
    y3 = y3 * ss3_ref[0, 0:1, :] + ss3_ref[0, 1:2, :] + carry_ref[...]
    new_act = jnp.maximum(y3, 0.0)
    carry_ref[...] = new_act

    @pl.when(b == pl.num_programs(0) - 1)
    def _():
        o_ref[...] = new_act.astype(o_ref.dtype)


@functools.lru_cache(maxsize=None)
def _build_stacked(nb, M, C4, Pp, W):
    pad = _ceil_to(W + 2, 8)                    # zero-halo rows each side
    assert pad >= W + 1                         # tap reads stay inside zbuf
    zrows = M + 2 * pad
    Kc = 9 * Pp
    kern = functools.partial(_stacked_bottleneck_kernel, W=W, M=M, pad=pad, Pp=Pp)
    return pl.pallas_call(
        kern,
        out_shape=jax.ShapeDtypeStruct((M, C4), jnp.bfloat16),
        grid_spec=pltpu.PrefetchScalarGridSpec(
            num_scalar_prefetch=0,
            grid=(nb,),
            in_specs=[
                pl.BlockSpec((M, C4), lambda b: (0, 0)),          # x (bf16, resident)
                pl.BlockSpec((M, Kc), lambda b: (0, 0)),          # tap mask (bf16)
                pl.BlockSpec((1, C4, Pp), lambda b: (b, 0, 0)),   # w1
                pl.BlockSpec((1, 8, Pp), lambda b: (b, 0, 0)),    # ss1
                pl.BlockSpec((1, Kc, Pp), lambda b: (b, 0, 0)),   # w2 (K-concat taps)
                pl.BlockSpec((1, 8, Pp), lambda b: (b, 0, 0)),    # ss2
                pl.BlockSpec((1, Pp, C4), lambda b: (b, 0, 0)),   # w3
                pl.BlockSpec((1, 8, C4), lambda b: (b, 0, 0)),    # ss3
            ],
            out_specs=pl.BlockSpec((M, C4), lambda b: (0, 0)),
            scratch_shapes=[pltpu.VMEM((M, C4), jnp.float32),         # f32 carry
                            pltpu.VMEM((zrows, Pp), jnp.bfloat16),    # halo zbuf
                            pltpu.VMEM((M, Kc), jnp.bfloat16)],       # tap buffer
        ),
        compiler_params=pltpu.CompilerParams(
            dimension_semantics=("arbitrary",),
            vmem_limit_bytes=64 * 1024 * 1024),
    )


def stacked_bottlenecks(x, sp):
    N, H, W, C4 = x.shape
    M = N * H * W
    assert M % 8 == 0 and C4 % 128 == 0
    fn = _build_stacked(sp["nb"], M, C4, sp["pp"], W)
    out = fn(x.reshape(M, C4).astype(jnp.bfloat16), _tap_mask(N, H, W, sp["pp"]),
             sp["w1"], sp["ss1"], sp["w2"], sp["ss2"], sp["w3"], sp["ss3"])
    return out.reshape(N, H, W, C4)


# ----------------------------------------------------------------------------
# Fused "conv chain" kernel: a sequence of stride-1 ConvUnits (1x1 / 3x3 pad=1)
# in ONE pallas_call.  Activation stays resident in VMEM; 3x3 convs use the same
# masked tap-buffer single-matmul technique.  Used for YOLO heads and tails.
# ----------------------------------------------------------------------------
_CHAIN_GROUP_BYTES = 12 * 1024 * 1024   # per-call resident bf16 weight budget


@functools.lru_cache(maxsize=None)
def _build_chain(specs, M, W, c3in):
    """specs: tuple of (ksize, cin_p, cout_p) per conv; c3in: padded 3x3 input width."""
    has3 = any(k == 3 for k, _, _ in specs)
    n = len(specs)
    pad = _ceil_to(W + 2, 8) if has3 else 0
    if has3:
        assert pad >= W + 1
    cout_last = specs[-1][2]

    def kernel(*refs):
        if has3:
            x_ref, mask_ref = refs[0], refs[1]
            wss = refs[2:2 + 2 * n]
            o_ref = refs[2 + 2 * n]
            zbuf_ref, tap_ref = refs[3 + 2 * n], refs[4 + 2 * n]
            zbuf_ref[...] = jnp.zeros_like(zbuf_ref)     # zero halo
        else:
            x_ref = refs[0]
            wss = refs[1:1 + 2 * n]
            o_ref = refs[1 + 2 * n]

        act = x_ref[...]                                 # bf16 (M, cin_p0)
        for idx, (k, cin_p, cout_p) in enumerate(specs):
            w_ref, ss_ref = wss[2 * idx], wss[2 * idx + 1]
            if k == 1:
                y = jnp.dot(act, w_ref[...], preferred_element_type=jnp.float32)
            else:
                zbuf_ref[pl.ds(pad, M), :] = act
                for dy in range(3):
                    for dx in range(3):
                        t = dy * 3 + dx
                        off = (dy - 1) * W + (dx - 1)
                        tap_ref[:, t * cin_p:(t + 1) * cin_p] = (
                            zbuf_ref[pl.ds(pad + off, M), :]
                            * mask_ref[:, t * cin_p:(t + 1) * cin_p])
                y = jnp.dot(tap_ref[...], w_ref[...],
                            preferred_element_type=jnp.float32)
            y = y * ss_ref[0:1, :] + ss_ref[1:2, :]
            y = jnp.where(y >= 0, y, 0.1 * y)            # LeakyReLU(0.1)
            act = y.astype(jnp.bfloat16)
        o_ref[...] = act

    in_specs = [pl.BlockSpec((M, specs[0][1]), lambda i: (0, 0))]
    if has3:
        in_specs.append(pl.BlockSpec((M, 9 * c3in), lambda i: (0, 0)))
    for k, cin_p, cout_p in specs:
        in_specs.append(pl.BlockSpec((k * k * cin_p, cout_p), lambda i: (0, 0)))
        in_specs.append(pl.BlockSpec((8, cout_p), lambda i: (0, 0)))
    scratch = []
    if has3:
        scratch = [pltpu.VMEM((M + 2 * pad, c3in), jnp.bfloat16),
                   pltpu.VMEM((M, 9 * c3in), jnp.bfloat16)]

    return pl.pallas_call(
        kernel,
        out_shape=jax.ShapeDtypeStruct((M, cout_last), jnp.bfloat16),
        grid_spec=pltpu.PrefetchScalarGridSpec(
            num_scalar_prefetch=0,
            grid=(1,),
            in_specs=in_specs,
            out_specs=pl.BlockSpec((M, cout_last), lambda i: (0, 0)),
            scratch_shapes=scratch,
        ),
        compiler_params=pltpu.CompilerParams(
            dimension_semantics=("arbitrary",),
            vmem_limit_bytes=48 * 1024 * 1024),
    )


def chain_fwd(x, groups):
    """x: (N,H,W,C) activation; groups: prep_chain output.  Stride-1 conv chain."""
    N, H, W, C = x.shape
    M = N * H * W
    assert M % 8 == 0, "batch*H*W must be a multiple of 8"
    act = x.reshape(M, C).astype(jnp.bfloat16)
    for g in groups:
        cin_p = g["specs"][0][1]
        if act.shape[1] < cin_p:
            act = jnp.pad(act, ((0, 0), (0, cin_p - act.shape[1])))
        args = [act]
        if g["c3in"] is not None:
            args.append(_tap_mask(N, H, W, g["c3in"]))
        for w, ss in g["arrays"]:
            args.extend((w, ss))
        act = _build_chain(g["specs"], M, W, g["c3in"])(*args)
        if act.shape[1] != g["cout"]:
            act = act[:, :g["cout"]]
    return act.reshape(N, H, W, act.shape[1])


# ----------------------------------------------------------------------------
# JAX glue: maxpool (stem) and bilinear 2x upsample (align_corners=True)
# ----------------------------------------------------------------------------
def maxpool_3x3_s2_p1(x):
    N, H, W, C = x.shape
    Ho = (H + 2 - 3) // 2 + 1
    Wo = (W + 2 - 3) // 2 + 1
    xp = jnp.pad(x, ((0, 0), (1, 1), (1, 1), (0, 0)), constant_values=-jnp.inf)
    out = None
    for dy in range(3):
        for dx in range(3):
            s = xp[:, dy:dy + (Ho - 1) * 2 + 1:2, dx:dx + (Wo - 1) * 2 + 1:2, :]
            out = s if out is None else jnp.maximum(out, s)
    return out


def upsample_bilinear_2x(x):
    """nn.UpsamplingBilinear2d(scale_factor=2) (align_corners=True), NHWC, bf16 out."""
    N, H, W, C = x.shape
    Ho, Wo = 2 * H, 2 * W

    def coords(n_in, n_out):
        if n_in == 1 or n_out == 1:
            return np.zeros((n_out,), np.float32)
        return np.arange(n_out, dtype=np.float32) * (n_in - 1) / (n_out - 1)

    ys, xs = coords(H, Ho), coords(W, Wo)
    y0 = np.clip(np.floor(ys).astype(np.int32), 0, H - 1)
    y1 = np.clip(y0 + 1, 0, H - 1)
    x0 = np.clip(np.floor(xs).astype(np.int32), 0, W - 1)
    x1 = np.clip(x0 + 1, 0, W - 1)
    wy = jnp.asarray((ys - y0).astype(np.float32))[None, :, None, None]
    wx = jnp.asarray((xs - x0).astype(np.float32))[None, None, :, None]

    xr0 = x[:, y0].astype(jnp.float32)      # hoisted row gathers (used twice each)
    xr1 = x[:, y1].astype(jnp.float32)
    top = xr0[:, :, x0] * (1 - wx) + xr0[:, :, x1] * wx
    bot = xr1[:, :, x0] * (1 - wx) + xr1[:, :, x1] * wx
    return (top * (1 - wy) + bot * wy).astype(jnp.bfloat16)


# ----------------------------------------------------------------------------
# Deterministic parameter construction (synthetic; no checkpoint load)
# ----------------------------------------------------------------------------
_RNG = np.random.default_rng(0)


def make_conv(cin, cout, ksize, bias=True):
    fan_in = cin * ksize * ksize
    w = (_RNG.standard_normal((ksize, ksize, cin, cout)) *
         np.sqrt(2.0 / fan_in)).astype(np.float32)
    b = (0.01 * _RNG.standard_normal(cout)).astype(np.float32) if bias \
        else np.zeros((cout,), np.float32)
    gamma = (1.0 + 0.1 * _RNG.standard_normal(cout)).astype(np.float32)
    beta = (0.1 * _RNG.standard_normal(cout)).astype(np.float32)
    rm = (0.1 * _RNG.standard_normal(cout)).astype(np.float32)
    rv = (1.0 + 0.1 * np.abs(_RNG.standard_normal(cout))).astype(np.float32)
    return {"w": w, "b": b, "gamma": gamma, "beta": beta, "rm": rm, "rv": rv}


def make_bottleneck(inplanes, planes, stride):
    d = {"conv1": make_conv(inplanes, planes, 1, bias=False),
         "conv2": make_conv(planes, planes, 3, bias=False),
         "conv3": make_conv(planes, planes * 4, 1, bias=False),
         "stride": stride}
    if stride != 1 or inplanes != planes * 4:
        d["down"] = make_conv(inplanes, planes * 4, 1, bias=False)
    return d


def make_yolo_block(cin, cout):
    return [make_conv(cin, cout, 1), make_conv(cout, cout * 2, 3),
            make_conv(cout * 2, cout, 1), make_conv(cout, cout * 2, 3),
            make_conv(cout * 2, cout, 1)]


def build_params():
    raw = {"stem": make_conv(3, 64, 7, bias=False)}
    inplanes = 64

    def make_layer(planes, blocks, stride):
        nonlocal inplanes
        layer = [make_bottleneck(inplanes, planes, stride)]
        inplanes = planes * 4
        for _ in range(blocks - 1):
            layer.append(make_bottleneck(inplanes, planes, 1))
        return layer

    # ResNet-152: Bottleneck, [3, 8, 36, 3]
    raw["layer1"] = make_layer(64, 3, 1)
    raw["layer2"] = make_layer(128, 8, 2)    # -> scale_4 (512 ch)
    raw["layer3"] = make_layer(256, 36, 2)   # -> scale_2 (1024 ch)
    raw["layer4"] = make_layer(512, 3, 2)    # -> scale_1 (2048 ch)

    raw["s1_head"] = make_yolo_block(2048, 512)
    raw["s2_head"] = make_yolo_block(1024 + 256, 256)
    raw["s4_head"] = make_yolo_block(512 + 128, 128)
    raw["s1_tail"] = [make_conv(512, 1024, 3), make_conv(1024, NUM_FEATURES, 1)]
    raw["s2_tail"] = [make_conv(256, 512, 3), make_conv(512, NUM_FEATURES, 1)]
    raw["s4_tail"] = [make_conv(128, 256, 3), make_conv(256, NUM_FEATURES, 1)]
    raw["s1_pass"] = make_conv(512, 256, 1)
    raw["s2_pass"] = make_conv(256, 128, 1)
    return raw


# ---- one-time prep: fold BN, pad & cast weights, build scale/shift slabs ----
def _fold_bn(p):
    scale = (p["gamma"] / np.sqrt(p["rv"] + _BN_EPS)).astype(np.float32)
    shift = (p["beta"] + (p["b"] - p["rm"]) * scale).astype(np.float32)
    return scale, shift


def prep_conv(p):
    kh, kw, cin, cout = p["w"].shape
    K, N = kh * kw * cin, cout
    _, Kp = _pick_k(K)
    _, Np = _pick_n(N)
    wq = np.zeros((Kp, Np), np.float32)
    wq[:K, :N] = p["w"].reshape(K, N)
    scale, shift = _fold_bn(p)
    ss = np.zeros((8, Np), np.float32)
    ss[0, :N] = scale
    ss[1, :N] = shift
    return {"kh": kh, "kw": kw, "cin": cin, "cout": cout,
            "wq": jnp.asarray(wq, jnp.bfloat16), "ss": jnp.asarray(ss)}


def prep_stacked(blocks):
    """Stack all identity (stride-1, no-downsample) bottlenecks of one layer."""
    nb = len(blocks)
    c4 = blocks[0]["conv3"]["w"].shape[3]
    planes = blocks[0]["conv1"]["w"].shape[3]
    pp = _ceil_to(planes, 128)
    kc = 9 * pp
    w1 = np.zeros((nb, c4, pp), np.float32)
    w2 = np.zeros((nb, kc, pp), np.float32)     # K-concatenated taps
    w3 = np.zeros((nb, pp, c4), np.float32)
    ss1 = np.zeros((nb, 8, pp), np.float32)
    ss2 = np.zeros((nb, 8, pp), np.float32)
    ss3 = np.zeros((nb, 8, c4), np.float32)
    for i, blk in enumerate(blocks):
        c1, c2, c3 = blk["conv1"], blk["conv2"], blk["conv3"]
        w1[i, :, :planes] = c1["w"].reshape(c4, planes)
        w2r = c2["w"].reshape(9, planes, planes)
        for t in range(9):
            w2[i, t * pp: t * pp + planes, :planes] = w2r[t]
        w3[i, :planes, :] = c3["w"].reshape(planes, c4)
        for ss, cc, width in ((ss1, c1, planes), (ss2, c2, planes), (ss3, c3, c4)):
            sc, sh = _fold_bn(cc)
            ss[i, 0, :width] = sc
            ss[i, 1, :width] = sh
    return {"nb": nb, "pp": pp, "c4": c4,
            "w1": jnp.asarray(w1, jnp.bfloat16),
            "w2": jnp.asarray(w2, jnp.bfloat16),
            "w3": jnp.asarray(w3, jnp.bfloat16),
            "ss1": jnp.asarray(ss1), "ss2": jnp.asarray(ss2),
            "ss3": jnp.asarray(ss3)}


def prep_chain(convs):
    """Group a stride-1 ConvUnit chain (ksize in {1,3}) into fused pallas_calls."""
    groups, cur, cur_bytes = [], [], 0
    for c in convs:
        kh, kw, cin, cout = c["w"].shape
        nbytes = (kh * kw * _ceil_to(cin, 128)) * _ceil_to(cout, 128) * 2
        if cur and cur_bytes + nbytes > _CHAIN_GROUP_BYTES:
            groups.append(cur)
            cur, cur_bytes = [], 0
        cur.append(c)
        cur_bytes += nbytes
    if cur:
        groups.append(cur)

    prepped = []
    for g in groups:
        specs, arrays, c3in = [], [], None
        for c in g:
            kh, kw, cin, cout = c["w"].shape
            assert kh == kw and kh in (1, 3)
            cin_p, cout_p = _ceil_to(cin, 128), _ceil_to(cout, 128)
            if kh == 3:
                assert c3in is None or c3in == cin_p
                c3in = cin_p
            w = np.zeros((kh * kw * cin_p, cout_p), np.float32)
            wr = c["w"].reshape(kh * kw, cin, cout)
            for t in range(kh * kw):
                w[t * cin_p: t * cin_p + cin, :cout] = wr[t]
            sc, sh = _fold_bn(c)
            ss = np.zeros((8, cout_p), np.float32)
            ss[0, :cout] = sc
            ss[1, :cout] = sh
            specs.append((kh, cin_p, cout_p))
            arrays.append((jnp.asarray(w, jnp.bfloat16), jnp.asarray(ss)))
        prepped.append({"specs": tuple(specs), "arrays": arrays,
                        "c3in": c3in, "cout": g[-1]["w"].shape[3]})
    return prepped


def prep_params(raw):
    p = {"stem": prep_conv(raw["stem"])}

    def prep_first(blk):
        d = {"conv1": prep_conv(blk["conv1"]), "conv2": prep_conv(blk["conv2"]),
             "conv3": prep_conv(blk["conv3"]), "stride": blk["stride"]}
        if "down" in blk:
            d["down"] = prep_conv(blk["down"])
        return d

    for name in ("layer1", "layer2", "layer3", "layer4"):
        blocks = raw[name]
        p[name] = {"first": prep_first(blocks[0]), "rest": prep_stacked(blocks[1:])}
    for name in ("s1_head", "s2_head", "s4_head",
                 "s1_tail", "s2_tail", "s4_tail"):
        p[name] = prep_chain(raw[name])
    p["s1_pass"] = prep_conv(raw["s1_pass"])
    p["s2_pass"] = prep_conv(raw["s2_pass"])
    return p


# ----------------------------------------------------------------------------
# Forward pass
# ----------------------------------------------------------------------------
def first_bottleneck_fwd(x, blk):
    # TODO(synk): stride-2 3x3 breaks the constant-offset tap trick, so the
    # downsampling bottleneck is kept as 4 individual fused conv calls.
    identity = x
    y = conv_bn_act(x, blk["conv1"], 1, 0, 0.0)                      # ReLU
    y = conv_bn_act(y, blk["conv2"], blk["stride"], 1, 0.0)          # ReLU
    if "down" in blk:
        identity = conv_bn_act(x, blk["down"], blk["stride"], 0, 1.0)  # no act
    # conv3 + BN + residual add + ReLU fused
    return conv_bn_act(y, blk["conv3"], 1, 0, 0.0, residual=identity)


def resnet_layer_fwd(x, layer):
    x = first_bottleneck_fwd(x, layer["first"])
    if layer["rest"]["nb"] > 0:
        x = stacked_bottlenecks(x, layer["rest"])
    return x


def forward(params, x_nchw):
    x = jnp.transpose(x_nchw, (0, 2, 3, 1)).astype(jnp.float32)  # NCHW -> NHWC

    # --- ResNet-152 backbone feature extractor ---
    x = conv_bn_act(x, params["stem"], 2, 3, 0.0)
    x = maxpool_3x3_s2_p1(x)
    x = resnet_layer_fwd(x, params["layer1"])
    x = resnet_layer_fwd(x, params["layer2"]); scale_4 = x
    x = resnet_layer_fwd(x, params["layer3"]); scale_2 = x
    x = resnet_layer_fwd(x, params["layer4"]); scale_1 = x

    # --- YOLO heads / tails / pass-throughs (fused conv-chain kernels) ---
    s1_mid = chain_fwd(scale_1, params["s1_head"])
    s1_out = chain_fwd(s1_mid, params["s1_tail"])
    # TODO(synk): YoloAnchorLayer undefined in reference -> identity.

    s2_pass = upsample_bilinear_2x(conv_bn_act(s1_mid, params["s1_pass"], 1, 0, 0.1))
    s2_in = jnp.concatenate([scale_2, s2_pass], axis=-1)
    s2_mid = chain_fwd(s2_in, params["s2_head"])
    s2_out = chain_fwd(s2_mid, params["s2_tail"])

    s4_pass = upsample_bilinear_2x(conv_bn_act(s2_mid, params["s2_pass"], 1, 0, 0.1))
    s4_in = jnp.concatenate([scale_4, s4_pass], axis=-1)
    s4_mid = chain_fwd(s4_in, params["s4_head"])
    s4_out = chain_fwd(s4_mid, params["s4_tail"])

    to_nchw = lambda t: jnp.transpose(t.astype(jnp.float32), (0, 3, 1, 2))
    return to_nchw(s1_out), to_nchw(s2_out), to_nchw(s4_out)


# ----------------------------------------------------------------------------
if __name__ == "__main__":
    raw = build_params()
    params = prep_params(raw)

    # Small input consistent with the module: NCHW, 3 channels, 64x64 spatial
    # (overall backbone stride 32 -> output scales of 2x2 / 4x4 / 8x8).
    key = jax.random.PRNGKey(0)
    X = jax.random.normal(key, (2, 3, 64, 64), jnp.float32)

    s1, s2, s4 = forward(params, X)
    jax.block_until_ready(s1)
    jax.block_until_ready(s2)
    jax.block_until_ready(s4)

    assert s1.shape == (2, NUM_FEATURES, 2, 2), s1.shape
    assert s2.shape == (2, NUM_FEATURES, 4, 4), s2.shape
    assert s4.shape == (2, NUM_FEATURES, 8, 8), s4.shape
    assert all(bool(jnp.isfinite(t).all()) for t in (s1, s2, s4))

    print("KERNEL_OK")
</pallas_src>

<mosaic_0001>
module attributes {stable_mosaic.version = 11 : i64} {
  func.func @_mm_single(%arg0: i32, %arg1: i32, %arg2: memref<256x256xbf16, #tpu.memory_space<vmem>>, %arg3: memref<256x128xbf16, #tpu.memory_space<vmem>>, %arg4: memref<8x128xf32, #tpu.memory_space<vmem>>, %arg5: memref<256x128xbf16, #tpu.memory_space<vmem>>) attributes {dimension_semantics = [#tpu.dimension_semantics<parallel>, #tpu.dimension_semantics<parallel>], iteration_bounds = array<i64: 8, 1>, scalar_prefetch = 0 : i64, scratch_operands = 0 : i64, tpu.core_type = #tpu.core_type<tc>, window_params = [{transform_indices = @transform_0, window_bounds = array<i64: 256, 256>}, {transform_indices = @transform_1, window_bounds = array<i64: 256, 128>}, {transform_indices = @transform_2, window_bounds = array<i64: 8, 128>}, {transform_indices = @transform_3, window_bounds = array<i64: 256, 128>}]} {
    %c0 = arith.constant 0 : index
    %c0_0 = arith.constant 0 : index
    %0 = vector.load %arg2[%c0, %c0_0] : memref<256x256xbf16, #tpu.memory_space<vmem>>, vector<256x256xbf16>
    %c0_1 = arith.constant 0 : index
    %c0_2 = arith.constant 0 : index
    %1 = vector.load %arg3[%c0_1, %c0_2] : memref<256x128xbf16, #tpu.memory_space<vmem>>, vector<256x128xbf16>
    %cst = arith.constant dense<0.000000e+00> : vector<256x128xf32>
    %2 = tpu.matmul %0, %1, %cst {dimension_numbers = #tpu.dot_dimension_numbers<[1], [0], [0], [1], [0, 0, 1, 1], [], []>} : vector<256x256xbf16>, vector<256x128xbf16>, vector<256x128xf32> -> vector<256x128xf32>
    %c0_3 = arith.constant 0 : index
    %c0_4 = arith.constant 0 : index
    %3 = vector.load %arg4[%c0_3, %c0_4] : memref<8x128xf32, #tpu.memory_space<vmem>>, vector<1x128xf32>
    %4 = vector.broadcast %3 : vector<1x128xf32> to vector<256x128xf32>
    %5 = arith.mulf %2, %4 : vector<256x128xf32>
    %c1 = arith.constant 1 : index
    %c0_5 = arith.constant 0 : index
    %6 = vector.load %arg4[%c1, %c0_5] : memref<8x128xf32, #tpu.memory_space<vmem>>, vector<1x128xf32>
    %7 = vector.broadcast %6 : vector<1x128xf32> to vector<256x128xf32>
    %8 = arith.addf %5, %7 : vector<256x128xf32>
    %cst_6 = arith.constant 0.000000e+00 : f32
    %9 = vector.broadcast %cst_6 : f32 to vector<256x128xf32>
    %10 = arith.cmpf oge, %8, %9 : vector<256x128xf32>
    %cst_7 = arith.constant 0.000000e+00 : f32
    %11 = vector.broadcast %cst_7 : f32 to vector<256x128xf32>
    %12 = arith.mulf %11, %8 : vector<256x128xf32>
    %13 = arith.select %10, %8, %12 : vector<256x128xi1>, vector<256x128xf32>
    %14 = arith.truncf %13 : vector<256x128xf32> to vector<256x128xbf16>
    %c0_8 = arith.constant 0 : index
    %c0_9 = arith.constant 0 : index
    %15 = vector.load %arg5[%c0_8, %c0_9] : memref<256x128xbf16, #tpu.memory_space<vmem>>, vector<256x128xbf16>
    tpu.vector_store %arg5[%c0_8, %c0_9], %14 {strides = array<i32>} : memref<256x128xbf16, #tpu.memory_space<vmem>>, vector<256x128xbf16>,
    return
  }
  func.func @transform_0(%arg0: i32, %arg1: i32) -> (i32, i32) {
    %c0_i32 = arith.constant 0 : i32
    %c0_i32_0 = arith.constant 0 : i32
    return %arg0, %c0_i32 : i32, i32
  }
  func.func @transform_1(%arg0: i32, %arg1: i32) -> (i32, i32) {
    %c0_i32 = arith.constant 0 : i32
    %c0_i32_0 = arith.constant 0 : i32
    return %c0_i32, %arg1 : i32, i32
  }
  func.func @transform_2(%arg0: i32, %arg1: i32) -> (i32, i32) {
    %c0_i32 = arith.constant 0 : i32
    %c0_i32_0 = arith.constant 0 : i32
    return %c0_i32, %arg1 : i32, i32
  }
  func.func @transform_3(%arg0: i32, %arg1: i32) -> (i32, i32) {
    %c0_i32 = arith.constant 0 : i32
    return %arg0, %arg1 : i32, i32
  }
}

</mosaic_0001>

<bundles_post_ra>
// kernel: tpu_custom_call.1
= control target key start
LH: loop header
LB: loop body
LE: loop exit
PB: predicated region body
PF: predicated region fallthrough
CT: control target
= control target key end

     0   :  { %8 = vsyncpa [#allocation3], 0  ;;  %s2197_s0 = inlined_call_operand.hbm [shape: bf16[2048,256], index: 0, kind: input, shape index: {}]   ;;  %s2198_s1 = inlined_call_operand.hbm [shape: bf16[256,128], index: 1, kind: input, shape index: {}]   ;;  %s2199_s2 = inlined_call_operand.hbm [shape: f32[8,128], index: 2, kind: input, shape index: {}]   ;;  %s2200_s3 = inlined_call_operand.hbm [shape: bf16[2048,128], index: 3, kind: output, shape index: {}]  }
   0x1   :  { %10 = vsyncpa [#allocation3 + $0x1], 0 }
   0x2   :  { %11 = vsyncpa [#allocation6], 0 }
   0x3   :  { %12 = vsyncpa [#allocation4], 0 }
   0x4   :  { %14 = vsyncpa [#allocation4 + $0x1], 0  ;;  %s1889_s12 = smov 0   ;;  %s1891_s13 = smov 0  }
   0x5   :  { %s1893_s14 = smov 0   ;;  %s1895_s15 = smov 0  }
   0x6   :  { %s1897_s16 = smov 0   ;;  %s1899_s17 = smov 0  }
   0x7 LB: > { %s1180_s18 = sadd.s32 4294967295, %s1857_s17   ;;  %s1181_s19 = sadd.s32 4294967294, %s1857_s17   ;;  %s1857_s17 = sphi %s1899_s17, %s20_s17   ;;  %s1853_s16 = sphi %s1897_s16, %s2219_s16   ;;  %s1849_s15 = sphi %s1895_s15, %s2218_s15   ;;  %s1845_s14 = sphi %s1893_s14, %s2217_s14   ;;  %s1841_s13 = sphi %s1891_s13, %s2216_s13   ;;  %s1837_s12 = sphi %s1889_s12, %s2215_s12  }
   0x8   : > { %p52_p0 = scmp.ne.s32.totalorder %s1841_s13, %s1837_s12  ;;  %p1923_p1 = scmp.eq.s32.totalorder %s1180_s18, 0 }
   0x9   : > { %p1927_p2 = scmp.eq.s32.totalorder %s1180_s18, 7  ;;  %p136_p3 = scmp.eq.s32.totalorder %s1181_s19, 7 }
   0xa   : > { %s2204_s20 = scalar_select %p1923_p1, 1, 0 }
   0xb   : > { %p1933_p4 = por %p1923_p1, %p52_p0  ;;  %p1182_p5 = scmp.ge.s32.totalorder %s1857_s17, 1 }
   0xc   : > { %p1938_p6 = por %p136_p3, %p52_p0  ;;  %p143_p7 = scmp.lt.s32.totalorder %s1857_s17, 9 }
   0xd   : > { %s2206_s22 = scalar_select %p1933_p4, 1, 0 }
   0xe   : > { %s2207_s23 = scalar_select %p1938_p6, 1, 0 }
   0xf   : > { %p1943_p8 = pnand %p1182_p5, %p143_p7  ;;  %s1859_s25 = smov [#allocation5]  }
  0x10   : > { %s157_s26 = sshll.u32 %s1859_s25, 4  ;;  %s1860_s28 = smov [#allocation7]   ;;  %s158_s26 = int_to_ptr.vmem [resolvable:$true] %s157_s26 }
  0x11   : > { %p1552_p9 = pneg %p1943_p8  ;;  %s173_s29 = sshll.u32 %s1860_s28, 4  ;;  %s174_s29 = int_to_ptr.vmem [resolvable:$true] %s173_s29 }
  0x12   : > { %s1704_s30 = scalar_lea.vmem %s158_s26, 2048  ;;  %p1712_p3 = scmp.lt.s32.totalorder %s158_s26, %s158_s26 }
  0x13   : > { %p1951_p10 = pnand %p1552_p9, %p1923_p1  ;;  %p1705_p12 = scmp.ne.s32.totalorder %s158_s26, %s1704_s30 }
  0x14   : > { %p1713_p5 = scmp.lt.s32.totalorder %s1704_s30, %s1704_s30 }
  0x15   : > { %p1695_p11 = pneg %p1951_p10 }
  0x16   : > { %p1714_p7 = por %p1713_p5, %p1712_p3 }
  0x17   : > { %p1707_p13 = pnand %p1705_p12, %p1695_p11 }
  0x19   : > { %p1708_p0 = pneg %p1707_p13 }
  0x1b   : > { %p1715_p9 = pnand %p1714_p7, %p1708_p0 }
  0x1d   : > { %1718 = shalt.err (!%p1715_p9)
}
  0x1e   : > { %s1861_s4 = smov 64   ;;  %s1862_s5 = smov 4  }
  0x1f   : > { %1555 = dma.hbm_to_vmem [thread:$0]  (!%p1951_p10), %s2198_s1, 2048, %s158_s26, [#allocation6], %s1861_s4, %s1861_s4, %s1862_s5  }
  0x20   : > { %s1730_s8 = scalar_lea.vmem %s174_s29, 128  ;;  %p1738_p1 = scmp.lt.s32.totalorder %s174_s29, %s174_s29 }
  0x21   : > { %p1731_p6 = scmp.ne.s32.totalorder %s174_s29, %s1730_s8  ;;  %p1739_p4 = scmp.lt.s32.totalorder %s1730_s8, %s1730_s8 }
  0x23   : > { %p1733_p12 = pnand %p1731_p6, %p1695_p11  ;;  %p1740_p3 = por %p1739_p4, %p1738_p1 }
  0x25   : > { %p1734_p13 = pneg %p1733_p12 }
  0x27   : > { %p1741_p0 = pnand %p1740_p3, %p1734_p13 }
  0x29   : > { %1744 = shalt.err (!%p1741_p0)
}
  0x2a   : > { %1558 = dma.hbm_to_vmem [thread:$0]  (!%p1951_p10), %s2199_s2, 128, %s174_s29, [#allocation6]  }
  0x2b   : > { %s32_s11 = sadd.s32 1, %s1853_s16  ;;  %s39_s18 = sadd.s32 1, %s1845_s14 }
  0x2c   : > { %p34_p1 = scmp.ge.s32.totalorder %s32_s11, 8  ;;  %p46_p4 = scmp.ne.s32.totalorder %s1845_s14, %s1841_s13 }
  0x2d   : > { %p47_p6 = scmp.eq.s32.totalorder %s1857_s17, 0  ;;  %p1569_p11 = scmp.lt.s32.totalorder %s1857_s17, 8 }
  0x2e   : > { %s2221_s11 = smov (%p34_p1, %s32_s11), 0  ;;  %p1983_p7 = por %p1927_p2, %p46_p4 }
  0x2f   : > { %p48_p5 = por %p47_p6, %p46_p4  ;;  %s36_s25 = ssub.s32 %s1853_s16, %s2221_s11 }
  0x30   : > { %s184_s26 = sand.u32 1, %s1845_s14   ;;  %p37_p9 = scmp.eq.s32.totalorder %s36_s25, 0 }
  0x31   : > { %s1186_s27 = sshll.u32 %s184_s26, 8  ;;  %s1283_s28 = sshll.u32 %s1853_s16, 12 }
  0x32   : > { %s1992_s29 = scalar_select %p37_p9, %s1845_s14, %s39_s18  }
  0x33   : > { %s195_s5 = scalar_lea.hbm %s2197_s0, %s1283_s28  ;;  %s188_s6 = scalar_lea.vmem [#allocation2], %s1186_s27 }
  0x34   : > { %s196_s7 = sshll.u32 %s188_s6, 4  ;;  %p1999_p10 = pnand %p1569_p11, %p48_p5  ;;  %s197_s7 = int_to_ptr.vmem [resolvable:$true] %s196_s7 }
  0x35   : > { %s185_s8 = scalar_lea.sflag [#allocation3], %s184_s26  ;;  %s1758_s9 = scalar_lea.vmem %s197_s7, 4096 }
  0x36   : > { %p1747_p2 = pneg %p1999_p10  ;;  %p1759_p12 = scmp.ne.s32.totalorder %s197_s7, %s1758_s9 }
  0x37   : > { %s1863_s10 = smov [#allocation2]  }
  0x38   : > { %p1761_p13 = pnand %p1759_p12, %p1747_p2  ;;  %s1763_s18 = sshll.u32 %s1863_s10, 4  ;;  %s1764_s18 = int_to_ptr.vmem [resolvable:$false] %s1763_s18 }
  0x39   : > { %s1765_s25 = scalar_lea.vmem %s1764_s18, 8192  ;;  %p1766_p0 = scmp.lt.s32.totalorder %s197_s7, %s1764_s18 }
  0x3a   : > { %p1762_p3 = pneg %p1761_p13  ;;  %p1767_p1 = scmp.lt.s32.totalorder %s1765_s25, %s1758_s9 }
  0x3c   : > { %p1768_p4 = por %p1767_p1, %p1766_p0 }
  0x3e   : > { %p1769_p6 = pnand %p1768_p4, %p1762_p3 }
  0x40   : > { %1772 = shalt.err (!%p1769_p6)
}
  0x41   : > { %s1864_s27 = smov 128   ;;  %s1865_s28 = smov 8  }
  0x42   : > { %1562 = dma.hbm_to_vmem [thread:$0]  (!%p1999_p10), %s195_s5, 4096, %s197_s7, %s185_s8, %s1864_s27, %s1864_s27, %s1865_s28  }
  0x43   : > { %208 = sbr.rel (%p1943_p8) target bundleno = 389 (0x185), region = 32  ;;  %s2010_s26 = sand.u32 (!%p1943_p8), 1, %s1841_s13  }
  0x44   : > { %s1191_s30 = sshll.u32 (!%p1943_p8), %s2010_s26, 8  ;;  %s211_s4 = scalar_lea.sflag (!%p1943_p8), [#allocation3], %s2010_s26 }
  0x45   : > { %s2014_s6 = scalar_lea.vmem (!%p1943_p8), [#allocation2], %s1191_s30  ;;  %p2212_p11 = scmp.ne.s32.totalorder (!%p1943_p8), %s2206_s22, 0 }
  0x48   : > { %1824 = dma.done.wait (%p2212_p11), %s211_s4, 4096  }
  0x49   : > { %1826 = vsyncadd (%p2212_p11), %s211_s4, 4294963200  ;;  %p2213_p5 = scmp.ne.s32.totalorder %s2204_s20, 0 }
  0x4b   : > { %1828 = dma.done.wait (%p2213_p5), [#allocation6], 2176  }
  0x4c   : > { %1830 = vsyncadd (%p2213_p5), [#allocation6], 4294965120  ;;  %v1629_v0 = vld [vmem:[#allocation5 + $0x78] sm:$0xff]   ;;  %v1631_v2 = vld [vmem:[#allocation5 + $0x70] sm:$0xff]   ;;  %s1194_s20 = sshll.u32 %s2010_s26, 7  ;;  %s1316_s24 = sshll.u32 %s1849_s15, 11 }
  0x4d   : > { %v1630_v1 = vld [vmem:[#allocation5 + $0x38] sm:$0xff]   ;;  %1412 = vmatprep.subr.bf16.mxu0 %v1629_v0  ;;  %1524 = vmatprep.subr.bf16.mxu1 %v1629_v0  ;;  %v1632_v3 = vld [vmem:[#allocation5 + $0x30] sm:$0xff]   ;;  %v1633_v4 = vld [vmem:[#allocation5 + $0x68] sm:$0xff]   ;;  %s2075_s22 = scalar_lea.vmem [#allocation8], %s1194_s20  ;;  %s2146_s8 = scalar_lea.hbm %s2200_s3, %s1316_s24 }
  0x4e   : > { %1413 = vmatpush3.bf16.msra.mxu0 %v1630_v1  ;;  %1532 = vmatpush3.bf16.msra.mxu1 %v1630_v1  ;;  %v1634_v5 = vld [vmem:[#allocation5 + $0x28] sm:$0xff]   ;;  %v1635_v6 = vld [vmem:[#allocation5 + $0x60] sm:$0xff]   ;;  %v1637_v8 = vld [vmem:[#allocation5 + $0x58] sm:$0xff]   ;;  %s1074_s5 = sshll.u32 %s2075_s22, 4  ;;  %s1060_s15 = scalar_lea.sflag [#allocation4], %s2010_s26  ;;  %s2148_s5 = int_to_ptr.vmem [resolvable:$true] %s1074_s5 }
  0x4f   : > { %1414 = vmatprep.subr.bf16.mxu0 %v1631_v2  ;;  %1525 = vmatprep.subr.bf16.mxu1 %v1631_v2  ;;  %v1636_v7 = vld [vmem:[#allocation5 + $0x20] sm:$0xff]   ;;  %v1638_v9 = vld [vmem:[#allocation5 + $0x18] sm:$0xff]   ;;  %v1639_v10 = vld [vmem:[#allocation5 + $0x50] sm:$0xff]   ;;  %s1773_s9 = scalar_lea.vmem %s2148_s5, 2048  ;;  %s1866_s10 = smov [#allocation8]  }
  0x50   : > { %v1647_v11 = vld [vmem:[%s2014_s6 + $0x4] ss:$8 sps:$4 sm:$0xff]   ;;  %v1640_v13 = vld [vmem:[#allocation5 + $0x10] sm:$0xff]   ;;  %v1645_v18 = vld [vmem:[%s2014_s6] ss:$8 sps:$4 sm:$0xff]   ;;  %p1774_p8 = scmp.ne.s32.totalorder %s2148_s5, %s1773_s9  ;;  %s1777_s18 = sshll.u32 %s1866_s10, 4  ;;  %s1778_s18 = int_to_ptr.vmem [resolvable:$false] %s1777_s18 }
  0x51   : > { %v1650_v12 = vld [vmem:[%s2014_s6 + $0x84] ss:$8 sps:$4 sm:$0xff]   ;;  %600 = vmatprep.mubr.bf16.mxu0 %v1647_v11  ;;  %v1648_v19 = vld [vmem:[%s2014_s6 + $0x80] ss:$8 sps:$4 sm:$0xff]   ;;  %v1651_v20 = vld [vmem:[%s2014_s6 + $0x14] ss:$8 sps:$4 sm:$0xff]   ;;  %p1780_p2 = scmp.lt.s32.totalorder %s2148_s5, %s1778_s18 }
  0x52   : > { %1415 = vmatpush3.bf16.msra.mxu0 %v1632_v3  ;;  %1533 = vmatpush3.bf16.msra.mxu1 %v1632_v3  ;;  %v1641_v14 = vld [vmem:[#allocation5 + $0x48] sm:$0xff]   ;;  %v1643_v16 = vld [vmem:[#allocation5 + $0x40] sm:$0xff]   ;;  %v1653_v21 = vld [vmem:[%s2014_s6 + $0x94] ss:$8 sps:$4 sm:$0xff]   ;;  %p1775_p9 = pnand %p1774_p8, %p1983_p7  ;;  %s1779_s25 = scalar_lea.vmem %s1778_s18, 4096 }
  0x53   : > { %1416 = vmatprep.subr.bf16.mxu0 %v1633_v4  ;;  %1526 = vmatprep.subr.bf16.mxu1 %v1633_v4  ;;  %v1642_v15 = vld [vmem:[#allocation5 + $0x8] sm:$0xff]   ;;  %v1644_v17 = vld [vmem:[#allocation5] sm:$0xff]   ;;  %v1655_v22 = vld [vmem:[%s2014_s6 + $0x10] ss:$8 sps:$4 sm:$0xff]   ;;  %p1781_p12 = scmp.lt.s32.totalorder %s1779_s25, %s1773_s9 }
  0x54   : > { %664 = vmatprep.mubr.bf16.mxu1 %v1650_v12  ;;  %v1656_v23 = vld [vmem:[%s2014_s6 + $0x90] ss:$8 sps:$4 sm:$0xff]   ;;  %v1657_v24 = vld [vmem:[%s2014_s6 + $0x24] ss:$8 sps:$4 sm:$0xff]   ;;  %v1661_v26 = vld [vmem:[%s2014_s6 + $0x20] ss:$8 sps:$4 sm:$0xff]   ;;  %p1776_p10 = pneg %p1775_p9 }
  0x55   : > { %v1659_v25 = vld [vmem:[%s2014_s6 + $0xa4] ss:$8 sps:$4 sm:$0xff]   ;;  %v1662_v27 = vld [vmem:[%s2014_s6 + $0xa0] ss:$8 sps:$4 sm:$0xff]   ;;  %v1663_v28 = vld [vmem:[%s2014_s6 + $0x34] ss:$8 sps:$4 sm:$0xff]   ;;  %p1782_p13 = por %p1781_p12, %p1780_p2 }
  0x56   : > { %1417 = vmatpush3.bf16.msra.mxu0 %v1634_v5  ;;  %1534 = vmatpush3.bf16.msra.mxu1 %v1634_v5  ;;  %v1665_v29 = vld [vmem:[%s2014_s6 + $0xb4] ss:$8 sps:$4 sm:$0xff]   ;;  %v1667_v30 = vld [vmem:[%s2014_s6 + $0x30] ss:$8 sps:$4 sm:$0xff]   ;;  %v1669_v32 = vld [vmem:[%s2014_s6 + $0x44] ss:$8 sps:$4 sm:$0xff]  }
  0x57   : > { %1418 = vmatprep.subr.bf16.mxu0 %v1635_v6  ;;  %1527 = vmatprep.subr.bf16.mxu1 %v1635_v6  ;;  %v1668_v31 = vld [vmem:[%s2014_s6 + $0xb0] ss:$8 sps:$4 sm:$0xff]   ;;  %v1671_v33 = vld [vmem:[%s2014_s6 + $0xc4] ss:$8 sps:$4 sm:$0xff]   ;;  %v1673_v34 = vld [vmem:[%s2014_s6 + $0x40] ss:$8 sps:$4 sm:$0xff]   ;;  %p1783_p3 = pnand %p1782_p13, %p1776_p10 }
  0x58   : > { %v1674_v35 = vld [vmem:[%s2014_s6 + $0xc0] ss:$8 sps:$4 sm:$0xff]   ;;  %v1675_v36 = vld [vmem:[%s2014_s6 + $0x54] ss:$8 sps:$4 sm:$0xff]   ;;  %v1679_v38 = vld [vmem:[%s2014_s6 + $0x50] ss:$8 sps:$4 sm:$0xff]  }
  0x59   : > { %v1677_v37 = vld [vmem:[%s2014_s6 + $0xd4] ss:$8 sps:$4 sm:$0xff]   ;;  %v1680_v39 = vld [vmem:[%s2014_s6 + $0xd0] ss:$8 sps:$4 sm:$0xff]   ;;  %v1681_v40 = vld [vmem:[%s2014_s6 + $0x64] ss:$8 sps:$4 sm:$0xff]  }
  0x5a   : > { %1419 = vmatpush3.bf16.msra.mxu0 %v1636_v7  ;;  %1535 = vmatpush3.bf16.msra.mxu1 %v1636_v7  ;;  %v1683_v41 = vld [vmem:[%s2014_s6 + $0xe4] ss:$8 sps:$4 sm:$0xff]   ;;  %v1685_v42 = vld [vmem:[%s2014_s6 + $0x60] ss:$8 sps:$4 sm:$0xff]   ;;  %v1687_v44 = vld [vmem:[%s2014_s6 + $0x74] ss:$8 sps:$4 sm:$0xff]  }
  0x5b   : > { %1420 = vmatprep.subr.bf16.mxu0 %v1637_v8  ;;  %1528 = vmatprep.subr.bf16.mxu1 %v1637_v8  ;;  %v1686_v43 = vld [vmem:[%s2014_s6 + $0xe0] ss:$8 sps:$4 sm:$0xff]   ;;  %v1689_v45 = vld [vmem:[%s2014_s6 + $0xf4] ss:$8 sps:$4 sm:$0xff]   ;;  %v1691_v46 = vld [vmem:[%s2014_s6 + $0x70] ss:$8 sps:$4 sm:$0xff]  }
  0x5c   : > { %v1692_v47 = vld [vmem:[%s2014_s6 + $0xf0] ss:$8 sps:$4 sm:$0xff]   ;;  %v2056_v51 = vld [vmem:[#allocation7] ss:$0 sm:$0xff]  ;;  %v2058_v55 = vld [vmem:[#allocation7 + $0x1] ss:$0 sm:$0xff] }
  0x5e   : > { %1421 = vmatpush3.bf16.msra.mxu0 %v1638_v9  ;;  %1536 = vmatpush3.bf16.msra.mxu1 %v1638_v9 }
  0x5f   : > { %1422 = vmatprep.subr.bf16.mxu0 %v1639_v10  ;;  %1529 = vmatprep.subr.bf16.mxu1 %v1639_v10 }
  0x62   : > { %1423 = vmatpush3.bf16.msra.mxu0 %v1640_v13  ;;  %1537 = vmatpush3.bf16.msra.mxu1 %v1640_v13 }
  0x63   : > { %1424 = vmatprep.subr.bf16.mxu0 %v1641_v14  ;;  %1530 = vmatprep.subr.bf16.mxu1 %v1641_v14 }
  0x66   : > { %1425 = vmatpush3.bf16.msra.mxu0 %v1642_v15  ;;  %1538 = vmatpush3.bf16.msra.mxu1 %v1642_v15 }
  0x67   : > { %1426 = vmatprep.subr.bf16.mxu0 %v1643_v16  ;;  %1531 = vmatprep.subr.bf16.mxu1 %v1643_v16 }
  0x6a   : > { %1427 = vmatpush3.bf16.msra.mxu0 %v1644_v17  ;;  %1539 = vmatpush3.bf16.msra.mxu1 %v1644_v17 }
  0x6d   : > { %601 = vmatmul.mubr.bf16.vlgmr.msra.gmra.mxu0 %v1645_v18  ;;  %665 = vmatmul.mubr.bf16.vlgmr.msra.gmra.mxu1 %v1648_v19 }
  0x6e   : > { %608 = vmatprep.mubr.bf16.mxu0 %v1651_v20  ;;  %672 = vmatprep.mubr.bf16.mxu1 %v1653_v21 }
  0x75   : > { %609 = vmatmul.mubr.bf16.gmra.mxu0 %v1655_v22  ;;  %673 = vmatmul.mubr.bf16.gmra.mxu1 %v1656_v23 }
  0x76   : > { %616 = vmatprep.mubr.bf16.mxu0 %v1657_v24  ;;  %680 = vmatprep.mubr.bf16.mxu1 %v1659_v25 }
  0x7d   : > { %617 = vmatmul.mubr.bf16.gmra.mxu0 %v1661_v26  ;;  %681 = vmatmul.mubr.bf16.gmra.mxu1 %v1662_v27 }
  0x7e   : > { %624 = vmatprep.mubr.bf16.mxu0 %v1663_v28  ;;  %688 = vmatprep.mubr.bf16.mxu1 %v1665_v29 }
  0x85   : > { %625 = vmatmul.mubr.bf16.gmra.mxu0 %v1667_v30  ;;  %689 = vmatmul.mubr.bf16.gmra.mxu1 %v1668_v31 }
  0x86   : > { %632 = vmatprep.mubr.bf16.mxu0 %v1669_v32  ;;  %696 = vmatprep.mubr.bf16.mxu1 %v1671_v33 }
  0x8d   : > { %633 = vmatmul.mubr.bf16.gmra.mxu0 %v1673_v34  ;;  %697 = vmatmul.mubr.bf16.gmra.mxu1 %v1674_v35 }
  0x8e   : > { %640 = vmatprep.mubr.bf16.mxu0 %v1675_v36  ;;  %704 = vmatprep.mubr.bf16.mxu1 %v1677_v37 }
  0x95   : > { %641 = vmatmul.mubr.bf16.gmra.mxu0 %v1679_v38  ;;  %705 = vmatmul.mubr.bf16.gmra.mxu1 %v1680_v39 }
  0x96   : > { %648 = vmatprep.mubr.bf16.mxu0 %v1681_v40  ;;  %712 = vmatprep.mubr.bf16.mxu1 %v1683_v41 }
  0x9d   : > { %649 = vmatmul.mubr.bf16.gmra.mxu0 %v1685_v42  ;;  %713 = vmatmul.mubr.bf16.gmra.mxu1 %v1686_v43 }
  0x9e   : > { %656 = vmatprep.mubr.bf16.mxu0 %v1687_v44  ;;  %720 = vmatprep.mubr.bf16.mxu1 %v1689_v45 }
  0xa5   : > { %657 = vmatmul.mubr.bf16.gmra.mxu0 %v1691_v46  ;;  %721 = vmatmul.mubr.bf16.gmra.mxu1 %v1692_v47 }
 0x12d   : > { %v1428_v48 = vpop.f32.mrf.mxu0  ;;  %v1476_v49 = vpop.f32.mrf.mxu1 }
 0x12f   : > { %v1429_v50 = vpop.f32.mrf.mxu0  ;;  %v1477_v52 = vpop.f32.mrf.mxu1 }
 0x130   : > { %v1430_v53 = vadd.f32 %v1429_v50, %v1428_v48  ;;  %v1478_v54 = vadd.f32 %v1477_v52, %v1476_v49 }
 0x131   : > { %v1431_v56 = vpop.f32.mrf.mxu0  ;;  %v1479_v57 = vpop.f32.mrf.mxu1 }
 0x132   : > { %v734_v58 = vmul.f32 %v1430_v53, %v2056_v51  ;;  %v750_v59 = vmul.f32 %v1478_v54, %v2056_v51 }
 0x133   : > { %v1432_v60 = vpop.f32.mrf.mxu0  ;;  %v1480_v61 = vpop.f32.mrf.mxu1 }
 0x134   : > { %v771_v62 = vadd.f32 %v2058_v55, %v734_v58  ;;  %v787_v63 = vadd.f32 %v2058_v55, %v750_v59  ;;  %v1433_v0 = vadd.f32 %v1432_v60, %v1431_v56  ;;  %v1481_v1 = vadd.f32 %v1480_v61, %v1479_v57 }
 0x135   : > { %v1434_v2 = vpop.f32.mrf.mxu0  ;;  %v1482_v3 = vpop.f32.mrf.mxu1 }
 0x136   : > { %v735_v4 = vmul.f32 %v1433_v0, %v2056_v51  ;;  %v751_v5 = vmul.f32 %v1481_v1, %v2056_v51  ;;  %v835_v8 = vmul.f32 0.0, %v771_v62  ;;  %v851_v9 = vmul.f32 0.0, %v787_v63 }
 0x137   : > { %v1435_v6 = vpop.f32.mrf.mxu0  ;;  %v1483_v7 = vpop.f32.mrf.mxu1  ;;  %vm803_vm0 = vcmp.ge.f32.partialorder %v771_v62, 0.0  ;;  %vm819_vm1 = vcmp.ge.f32.partialorder %v787_v63, 0.0 }
 0x138   : > { %v1436_v10 = vadd.f32 %v1435_v6, %v1434_v2  ;;  %v1484_v11 = vadd.f32 %v1483_v7, %v1482_v3  ;;  %v772_v12 = vadd.f32 %v2058_v55, %v735_v4  ;;  %v788_v13 = vadd.f32 %v2058_v55, %v751_v5 }
 0x139   : > { %v1437_v14 = vpop.f32.mrf.mxu0  ;;  %v1485_v15 = vpop.f32.mrf.mxu1  ;;  %v867_v22 = vsel %vm803_vm0, %v771_v62, %v835_v8  ;;  %v883_v23 = vsel %vm819_vm1, %v787_v63, %v851_v9 }
 0x13a   : > { %v736_v16 = vmul.f32 %v1436_v10, %v2056_v51  ;;  %v752_v17 = vmul.f32 %v1484_v11, %v2056_v51  ;;  %vm804_vm2 = vcmp.ge.f32.partialorder %v772_v12, 0.0  ;;  %v836_v18 = vmul.f32 0.0, %v772_v12 }
 0x13b   : > { %vm820_vm3 = vcmp.ge.f32.partialorder %v788_v13, 0.0  ;;  %v852_v19 = vmul.f32 0.0, %v788_v13  ;;  %v1438_v20 = vpop.f32.mrf.mxu0  ;;  %v1486_v21 = vpop.f32.mrf.mxu1 }
 0x13c   : > { %v1439_v24 = vadd.f32 %v1438_v20, %v1437_v14  ;;  %v1487_v25 = vadd.f32 %v1486_v21, %v1485_v15  ;;  %v868_v26 = vsel %vm804_vm2, %v772_v12, %v836_v18  ;;  %v773_v28 = vadd.f32 %v2058_v55, %v736_v16 }
 0x13d   : > { %v884_v27 = vsel %vm820_vm3, %v788_v13, %v852_v19  ;;  %v789_v29 = vadd.f32 %v2058_v55, %v752_v17  ;;  %v1440_v30 = vpop.f32.mrf.mxu0  ;;  %v1488_v31 = vpop.f32.mrf.mxu1  ;;  %v1320_v32 = vpack.c.bf16 %v868_v26, %v867_v22 }
 0x13e   : > { %v1360_v33 = vpack.c.bf16 %v884_v27, %v883_v23  ;;  %v737_v34 = vmul.f32 %v1439_v24, %v2056_v51  ;;  %v753_v35 = vmul.f32 %v1487_v25, %v2056_v51  ;;  %v837_v40 = vmul.f32 0.0, %v773_v28 }
 0x13f   : > { %v1441_v36 = vpop.f32.mrf.mxu0  ;;  %v1489_v37 = vpop.f32.mrf.mxu1  ;;  %1321 = vst [vmem:[%s2075_s22] sm:$0xff] %v1320_v32   ;;  %v853_v41 = vmul.f32 0.0, %v789_v29  ;;  %vm805_vm4 = vcmp.ge.f32.partialorder %v773_v28, 0.0  ;;  %vm821_vm5 = vcmp.ge.f32.partialorder %v789_v29, 0.0 }
 0x140   : > { %1404 = vst [vmem:[%s2075_s22 + $0x40] sm:$0xff] %v1360_v33   ;;  %v1442_v38 = vadd.f32 %v1441_v36, %v1440_v30  ;;  %v1490_v39 = vadd.f32 %v1489_v37, %v1488_v31  ;;  %v774_v42 = vadd.f32 %v2058_v55, %v737_v34  ;;  %v790_v43 = vadd.f32 %v2058_v55, %v753_v35 }
 0x141   : > { %v1443_v44 = vpop.f32.mrf.mxu0  ;;  %v1491_v45 = vpop.f32.mrf.mxu1  ;;  %v869_v58 = vsel %vm805_vm4, %v773_v28, %v837_v40  ;;  %v885_v59 = vsel %vm821_vm5, %v789_v29, %v853_v41 }
 0x142   : > { %v738_v46 = vmul.f32 %v1442_v38, %v2056_v51  ;;  %v754_v47 = vmul.f32 %v1490_v39, %v2056_v51  ;;  %vm806_vm6 = vcmp.ge.f32.partialorder %v774_v42, 0.0  ;;  %v838_v48 = vmul.f32 0.0, %v774_v42 }
 0x143   : > { %vm822_vm7 = vcmp.ge.f32.partialorder %v790_v43, 0.0  ;;  %v854_v49 = vmul.f32 0.0, %v790_v43  ;;  %v1444_v50 = vpop.f32.mrf.mxu0  ;;  %v1492_v52 = vpop.f32.mrf.mxu1 }
 0x144   : > { %v775_v53 = vadd.f32 %v2058_v55, %v738_v46  ;;  %v791_v54 = vadd.f32 %v2058_v55, %v754_v47  ;;  %v1445_v56 = vadd.f32 %v1444_v50, %v1443_v44  ;;  %v1493_v57 = vadd.f32 %v1492_v52, %v1491_v45 }
 0x145   : > { %v870_v60 = vsel %vm806_vm6, %v774_v42, %v838_v48  ;;  %v886_v61 = vsel %vm822_vm7, %v790_v43, %v854_v49  ;;  %v1446_v62 = vpop.f32.mrf.mxu0  ;;  %v1494_v63 = vpop.f32.mrf.mxu1 }
 0x146   : > { %v1325_v0 = vpack.c.bf16 %v870_v60, %v869_v58  ;;  %v1365_v1 = vpack.c.bf16 %v886_v61, %v885_v59  ;;  %v739_v2 = vmul.f32 %v1445_v56, %v2056_v51  ;;  %v755_v3 = vmul.f32 %v1493_v57, %v2056_v51 }
 0x147   : > { %v1447_v4 = vpop.f32.mrf.mxu0  ;;  %v1495_v5 = vpop.f32.mrf.mxu1  ;;  %v839_v6 = vmul.f32 0.0, %v775_v53  ;;  %v855_v7 = vmul.f32 0.0, %v791_v54  ;;  %vm807_vm8 = vcmp.ge.f32.partialorder %v775_v53, 0.0  ;;  %vm823_vm9 = vcmp.ge.f32.partialorder %v791_v54, 0.0 }
 0x148   : > { %1397 = vst [vmem:[%s2075_s22 + $0x8] sm:$0xff] %v1325_v0   ;;  %1405 = vst [vmem:[%s2075_s22 + $0x48] sm:$0xff] %v1365_v1   ;;  %v1448_v8 = vadd.f32 %v1447_v4, %v1446_v62  ;;  %v1496_v9 = vadd.f32 %v1495_v5, %v1494_v63  ;;  %v776_v10 = vadd.f32 %v2058_v55, %v739_v2 }
 0x149   : > { %v792_v11 = vadd.f32 %v2058_v55, %v755_v3  ;;  %v1449_v12 = vpop.f32.mrf.mxu0  ;;  %v1497_v13 = vpop.f32.mrf.mxu1  ;;  %v871_v20 = vsel %vm807_vm8, %v775_v53, %v839_v6  ;;  %v887_v21 = vsel %vm823_vm9, %v791_v54, %v855_v7 }
 0x14a   : > { %v740_v14 = vmul.f32 %v1448_v8, %v2056_v51  ;;  %v756_v15 = vmul.f32 %v1496_v9, %v2056_v51  ;;  %vm808_vm10 = vcmp.ge.f32.partialorder %v776_v10, 0.0  ;;  %v840_v16 = vmul.f32 0.0, %v776_v10 }
 0x14b   : > { %vm824_vm11 = vcmp.ge.f32.partialorder %v792_v11, 0.0  ;;  %v856_v17 = vmul.f32 0.0, %v792_v11  ;;  %v1450_v18 = vpop.f32.mrf.mxu0  ;;  %v1498_v19 = vpop.f32.mrf.mxu1 }
 0x14c   : > { %v1451_v22 = vadd.f32 %v1450_v18, %v1449_v12  ;;  %v1499_v23 = vadd.f32 %v1498_v19, %v1497_v13  ;;  %v872_v24 = vsel %vm808_vm10, %v776_v10, %v840_v16  ;;  %v777_v26 = vadd.f32 %v2058_v55, %v740_v14 }
 0x14d   : > { %v888_v25 = vsel %vm824_vm11, %v792_v11, %v856_v17  ;;  %v793_v27 = vadd.f32 %v2058_v55, %v756_v15  ;;  %v1452_v28 = vpop.f32.mrf.mxu0  ;;  %v1500_v29 = vpop.f32.mrf.mxu1  ;;  %v1330_v30 = vpack.c.bf16 %v872_v24, %v871_v20 }
 0x14e   : > { %v1370_v31 = vpack.c.bf16 %v888_v25, %v887_v21  ;;  %v741_v32 = vmul.f32 %v1451_v22, %v2056_v51  ;;  %v757_v33 = vmul.f32 %v1499_v23, %v2056_v51  ;;  %v841_v38 = vmul.f32 0.0, %v777_v26 }
 0x14f   : > { %v1453_v34 = vpop.f32.mrf.mxu0  ;;  %v1501_v35 = vpop.f32.mrf.mxu1  ;;  %1398 = vst [vmem:[%s2075_s22 + $0x10] sm:$0xff] %v1330_v30   ;;  %v857_v39 = vmul.f32 0.0, %v793_v27  ;;  %vm809_vm12 = vcmp.ge.f32.partialorder %v777_v26, 0.0  ;;  %vm825_vm13 = vcmp.ge.f32.partialorder %v793_v27, 0.0 }
 0x150   : > { %1406 = vst [vmem:[%s2075_s22 + $0x50] sm:$0xff] %v1370_v31   ;;  %v1454_v36 = vadd.f32 %v1453_v34, %v1452_v28  ;;  %v1502_v37 = vadd.f32 %v1501_v35, %v1500_v29  ;;  %v778_v40 = vadd.f32 %v2058_v55, %v741_v32  ;;  %v794_v41 = vadd.f32 %v2058_v55, %v757_v33 }
 0x151   : > { %v1455_v42 = vpop.f32.mrf.mxu0  ;;  %v1503_v43 = vpop.f32.mrf.mxu1  ;;  %v873_v56 = vsel %vm809_vm12, %v777_v26, %v841_v38  ;;  %v889_v57 = vsel %vm825_vm13, %v793_v27, %v857_v39 }
 0x152   : > { %v742_v44 = vmul.f32 %v1454_v36, %v2056_v51  ;;  %v758_v45 = vmul.f32 %v1502_v37, %v2056_v51  ;;  %vm810_vm14 = vcmp.ge.f32.partialorder %v778_v40, 0.0  ;;  %v842_v46 = vmul.f32 0.0, %v778_v40 }
 0x153   : > { %vm826_vm15 = vcmp.ge.f32.partialorder %v794_v41, 0.0  ;;  %v858_v47 = vmul.f32 0.0, %v794_v41  ;;  %v1456_v48 = vpop.f32.mrf.mxu0  ;;  %v1504_v49 = vpop.f32.mrf.mxu1 }
 0x154   : > { %v779_v50 = vadd.f32 %v2058_v55, %v742_v44  ;;  %v795_v52 = vadd.f32 %v2058_v55, %v758_v45  ;;  %v1457_v53 = vadd.f32 %v1456_v48, %v1455_v42  ;;  %v1505_v54 = vadd.f32 %v1504_v49, %v1503_v43 }
 0x155   : > { %v874_v58 = vsel %vm810_vm14, %v778_v40, %v842_v46  ;;  %v890_v59 = vsel %vm826_vm15, %v794_v41, %v858_v47  ;;  %v1458_v60 = vpop.f32.mrf.mxu0  ;;  %v1506_v61 = vpop.f32.mrf.mxu1 }
 0x156   : > { %v1335_v62 = vpack.c.bf16 %v874_v58, %v873_v56  ;;  %v1375_v63 = vpack.c.bf16 %v890_v59, %v889_v57  ;;  %v743_v0 = vmul.f32 %v1457_v53, %v2056_v51  ;;  %v759_v1 = vmul.f32 %v1505_v54, %v2056_v51 }
 0x157   : > { %v1459_v2 = vpop.f32.mrf.mxu0  ;;  %v1507_v3 = vpop.f32.mrf.mxu1  ;;  %v843_v4 = vmul.f32 0.0, %v779_v50  ;;  %v859_v5 = vmul.f32 0.0, %v795_v52  ;;  %vm811_vm0 = vcmp.ge.f32.partialorder %v779_v50, 0.0  ;;  %vm827_vm1 = vcmp.ge.f32.partialorder %v795_v52, 0.0 }
 0x158   : > { %1399 = vst [vmem:[%s2075_s22 + $0x18] sm:$0xff] %v1335_v62   ;;  %1407 = vst [vmem:[%s2075_s22 + $0x58] sm:$0xff] %v1375_v63   ;;  %v1460_v6 = vadd.f32 %v1459_v2, %v1458_v60  ;;  %v1508_v7 = vadd.f32 %v1507_v3, %v1506_v61  ;;  %v780_v8 = vadd.f32 %v2058_v55, %v743_v0 }
 0x159   : > { %v796_v9 = vadd.f32 %v2058_v55, %v759_v1  ;;  %v1461_v10 = vpop.f32.mrf.mxu0  ;;  %v1509_v11 = vpop.f32.mrf.mxu1  ;;  %v875_v18 = vsel %vm811_vm0, %v779_v50, %v843_v4  ;;  %v891_v19 = vsel %vm827_vm1, %v795_v52, %v859_v5 }
 0x15a   : > { %v744_v12 = vmul.f32 %v1460_v6, %v2056_v51  ;;  %v760_v13 = vmul.f32 %v1508_v7, %v2056_v51  ;;  %vm812_vm2 = vcmp.ge.f32.partialorder %v780_v8, 0.0  ;;  %v844_v14 = vmul.f32 0.0, %v780_v8 }
 0x15b   : > { %vm828_vm3 = vcmp.ge.f32.partialorder %v796_v9, 0.0  ;;  %v860_v15 = vmul.f32 0.0, %v796_v9  ;;  %v1462_v16 = vpop.f32.mrf.mxu0  ;;  %v1510_v17 = vpop.f32.mrf.mxu1 }
 0x15c   : > { %v1463_v20 = vadd.f32 %v1462_v16, %v1461_v10  ;;  %v1511_v21 = vadd.f32 %v1510_v17, %v1509_v11  ;;  %v876_v22 = vsel %vm812_vm2, %v780_v8, %v844_v14  ;;  %v781_v24 = vadd.f32 %v2058_v55, %v744_v12 }
 0x15d   : > { %v892_v23 = vsel %vm828_vm3, %v796_v9, %v860_v15  ;;  %v797_v25 = vadd.f32 %v2058_v55, %v760_v13  ;;  %v1464_v26 = vpop.f32.mrf.mxu0  ;;  %v1512_v27 = vpop.f32.mrf.mxu1  ;;  %v1340_v28 = vpack.c.bf16 %v876_v22, %v875_v18 }
 0x15e   : > { %v1380_v29 = vpack.c.bf16 %v892_v23, %v891_v19  ;;  %v745_v30 = vmul.f32 %v1463_v20, %v2056_v51  ;;  %v761_v31 = vmul.f32 %v1511_v21, %v2056_v51  ;;  %v845_v36 = vmul.f32 0.0, %v781_v24 }
 0x15f   : > { %v1465_v32 = vpop.f32.mrf.mxu0  ;;  %v1513_v33 = vpop.f32.mrf.mxu1  ;;  %1400 = vst [vmem:[%s2075_s22 + $0x20] sm:$0xff] %v1340_v28   ;;  %v861_v37 = vmul.f32 0.0, %v797_v25  ;;  %vm813_vm4 = vcmp.ge.f32.partialorder %v781_v24, 0.0  ;;  %vm829_vm5 = vcmp.ge.f32.partialorder %v797_v25, 0.0 }
 0x160   : > { %1408 = vst [vmem:[%s2075_s22 + $0x60] sm:$0xff] %v1380_v29   ;;  %v1466_v34 = vadd.f32 %v1465_v32, %v1464_v26  ;;  %v1514_v35 = vadd.f32 %v1513_v33, %v1512_v27  ;;  %v782_v38 = vadd.f32 %v2058_v55, %v745_v30  ;;  %v798_v39 = vadd.f32 %v2058_v55, %v761_v31 }
 0x161   : > { %v1467_v40 = vpop.f32.mrf.mxu0  ;;  %v1515_v41 = vpop.f32.mrf.mxu1  ;;  %v877_v53 = vsel %vm813_vm4, %v781_v24, %v845_v36  ;;  %v893_v54 = vsel %vm829_vm5, %v797_v25, %v861_v37 }
 0x162   : > { %v746_v42 = vmul.f32 %v1466_v34, %v2056_v51  ;;  %v762_v43 = vmul.f32 %v1514_v35, %v2056_v51  ;;  %vm814_vm6 = vcmp.ge.f32.partialorder %v782_v38, 0.0  ;;  %v846_v44 = vmul.f32 0.0, %v782_v38 }
 0x163   : > { %vm830_vm7 = vcmp.ge.f32.partialorder %v798_v39, 0.0  ;;  %v862_v45 = vmul.f32 0.0, %v798_v39  ;;  %v1468_v46 = vpop.f32.mrf.mxu0  ;;  %v1516_v47 = vpop.f32.mrf.mxu1 }
 0x164   : > { %v783_v48 = vadd.f32 %v2058_v55, %v746_v42  ;;  %v799_v49 = vadd.f32 %v2058_v55, %v762_v43  ;;  %v1469_v50 = vadd.f32 %v1468_v46, %v1467_v40  ;;  %v1517_v52 = vadd.f32 %v1516_v47, %v1515_v41 }
 0x165   : > { %v878_v56 = vsel %vm814_vm6, %v782_v38, %v846_v44  ;;  %v894_v57 = vsel %vm830_vm7, %v798_v39, %v862_v45  ;;  %v1470_v58 = vpop.f32.mrf.mxu0  ;;  %v1518_v59 = vpop.f32.mrf.mxu1 }
 0x166   : > { %v1345_v60 = vpack.c.bf16 %v878_v56, %v877_v53  ;;  %v1385_v61 = vpack.c.bf16 %v894_v57, %v893_v54  ;;  %v747_v62 = vmul.f32 %v1469_v50, %v2056_v51  ;;  %v763_v63 = vmul.f32 %v1517_v52, %v2056_v51 }
 0x167   : > { %v1471_v0 = vpop.f32.mrf.mxu0  ;;  %v1519_v1 = vpop.f32.mrf.mxu1  ;;  %v847_v2 = vmul.f32 0.0, %v783_v48  ;;  %v863_v3 = vmul.f32 0.0, %v799_v49  ;;  %vm815_vm8 = vcmp.ge.f32.partialorder %v783_v48, 0.0  ;;  %vm831_vm9 = vcmp.ge.f32.partialorder %v799_v49, 0.0 }
 0x168   : > { %1401 = vst [vmem:[%s2075_s22 + $0x28] sm:$0xff] %v1345_v60   ;;  %1409 = vst [vmem:[%s2075_s22 + $0x68] sm:$0xff] %v1385_v61   ;;  %v1472_v4 = vadd.f32 %v1471_v0, %v1470_v58  ;;  %v1520_v5 = vadd.f32 %v1519_v1, %v1518_v59  ;;  %v784_v6 = vadd.f32 %v2058_v55, %v747_v62 }
 0x169   : > { %v800_v7 = vadd.f32 %v2058_v55, %v763_v63  ;;  %v1473_v8 = vpop.f32.mrf.mxu0  ;;  %v1521_v9 = vpop.f32.mrf.mxu1  ;;  %v879_v16 = vsel %vm815_vm8, %v783_v48, %v847_v2  ;;  %v895_v17 = vsel %vm831_vm9, %v799_v49, %v863_v3 }
 0x16a   : > { %v748_v10 = vmul.f32 %v1472_v4, %v2056_v51  ;;  %v764_v11 = vmul.f32 %v1520_v5, %v2056_v51  ;;  %vm816_vm10 = vcmp.ge.f32.partialorder %v784_v6, 0.0  ;;  %v848_v12 = vmul.f32 0.0, %v784_v6 }
 0x16b   : > { %vm832_vm11 = vcmp.ge.f32.partialorder %v800_v7, 0.0  ;;  %v864_v13 = vmul.f32 0.0, %v800_v7  ;;  %v1474_v14 = vpop.f32.mrf.mxu0  ;;  %v1522_v15 = vpop.f32.mrf.mxu1 }
 0x16c   : > { %v1475_v18 = vadd.f32 %v1474_v14, %v1473_v8  ;;  %v1523_v19 = vadd.f32 %v1522_v15, %v1521_v9  ;;  %v880_v20 = vsel %vm816_vm10, %v784_v6, %v848_v12  ;;  %v785_v22 = vadd.f32 %v2058_v55, %v748_v10 }
 0x16d   : > { %v896_v21 = vsel %vm832_vm11, %v800_v7, %v864_v13  ;;  %v801_v23 = vadd.f32 %v2058_v55, %v764_v11  ;;  %v1350_v24 = vpack.c.bf16 %v880_v20, %v879_v16 }
 0x16e   : > { %v1390_v25 = vpack.c.bf16 %v896_v21, %v895_v17  ;;  %v749_v26 = vmul.f32 %v1475_v18, %v2056_v51  ;;  %v765_v27 = vmul.f32 %v1523_v19, %v2056_v51  ;;  %v849_v28 = vmul.f32 0.0, %v785_v22 }
 0x16f   : > { %1402 = vst [vmem:[%s2075_s22 + $0x30] sm:$0xff] %v1350_v24   ;;  %v865_v29 = vmul.f32 0.0, %v801_v23  ;;  %vm817_vm12 = vcmp.ge.f32.partialorder %v785_v22, 0.0  ;;  %vm833_vm13 = vcmp.ge.f32.partialorder %v801_v23, 0.0 }
 0x170   : > { %1410 = vst [vmem:[%s2075_s22 + $0x70] sm:$0xff] %v1390_v25   ;;  %v786_v30 = vadd.f32 %v2058_v55, %v749_v26  ;;  %v802_v31 = vadd.f32 %v2058_v55, %v765_v27  ;;  %v881_v33 = vsel %vm817_vm12, %v785_v22, %v849_v28 }
 0x171   : > { %v897_v34 = vsel %vm833_vm13, %v801_v23, %v865_v29 }
 0x172   : > { %vm818_vm14 = vcmp.ge.f32.partialorder %v786_v30, 0.0  ;;  %v850_v32 = vmul.f32 0.0, %v786_v30  ;;  %vm834_vm15 = vcmp.ge.f32.partialorder %v802_v31, 0.0  ;;  %v866_v51 = vmul.f32 0.0, %v802_v31 }
 0x174   : > { %v882_v35 = vsel %vm818_vm14, %v786_v30, %v850_v32  ;;  %v898_v36 = vsel %vm834_vm15, %v802_v31, %v866_v51 }
 0x175   : > { %v1355_v55 = vpack.c.bf16 %v882_v35, %v881_v33  ;;  %v1395_v37 = vpack.c.bf16 %v898_v36, %v897_v34 }
 0x177   : > { %1403 = vst [vmem:[%s2075_s22 + $0x38] sm:$0xff] %v1355_v55   ;;  %1411 = vst [vmem:[%s2075_s22 + $0x78] sm:$0xff] %v1395_v37  }
 0x178   : > { %1786 = shalt.err (!%p1783_p3)
}
 0x179   : > { %s1787_s27 = scalar_lea.hbm %s2146_s8, 2048  ;;  %s1791_s4 = scalar_lea.hbm %s2200_s3, 16384 }
 0x17a   : > { %p1788_p0 = scmp.ne.s32.totalorder %s2146_s8, %s1787_s27  ;;  %p1792_p6 = scmp.lt.s32.totalorder %s2146_s8, %s2200_s3 }
 0x17b   : > { %p1793_p11 = scmp.lt.s32.totalorder %s1791_s4, %s1787_s27 }
 0x17c   : > { %p1789_p1 = pnand %p1788_p0, %p1983_p7 }
 0x17d   : > { %p1794_p5 = por %p1793_p11, %p1792_p6 }
 0x17e   : > { %p1790_p4 = pneg %p1789_p1 }
 0x180   : > { %p1795_p8 = pnand %p1794_p5, %p1790_p4 }
 0x182   : > { %1798 = shalt.err (!%p1795_p8)
}
 0x183   : > { %s1867_s22 = smov 64   ;;  %s1868_s24 = smov 4  }
 0x184   : > { %1550 = dma.vmem_to_hbm [thread:$0]  (%p1983_p7), %s2148_s5, 2048, %s2146_s8, %s1060_s15, %s1867_s22, %s1867_s22, %s1868_s24  }
 0x185 PF: > { %p1572_p9 = scmp.ge.s32.totalorder %s1857_s17, 2  ;;  %s1089_s7 = sand.u32 1, %s1837_s12  }
 0x186   : > { %p2214_p10 = scmp.ne.s32.totalorder %s2207_s23, 0  ;;  %s1090_s21 = scalar_lea.sflag [#allocation4], %s1089_s7 }
 0x188   : > { %p1564_p2 = pnand %p1572_p9, %p2214_p10 }
 0x18a   : > { %p1565_p12 = pneg %p1564_p2 }
 0x18c   : > { %1832 = dma.done.wait (%p1565_p12), %s1090_s21, 2048  }
 0x18d   : > { %1834 = vsyncadd (%p1565_p12), %s1090_s21, 4294965248  ;;  %s20_s17 = sadd.s32 1, %s1857_s17   ;;  %s2215_s12 = smov %s1841_s13 }
 0x18e   : > { %p17_p13 = scmp.ge.s32.totalorder %s20_s17, 10   ;;  %s2216_s13 = smov %s1845_s14 }
 0x18f   : > { %s2217_s14 = smov %s1992_s29  ;;  %s2218_s15 = smov %s1853_s16 }
 0x190   : > { %s2219_s16 = smov %s2221_s11  ;;  %19 = sbr.rel (!%p17_p13) target bundleno = 7 (0x7), region = 87 }
 0x195   :  { %1095 = vsyncpa [#allocation3], 1 }
 0x196   :  { %1097 = vsyncpa [#allocation3 + $0x1], 1 }
 0x197   :  { %1098 = vsyncpa [#allocation6], 1 }
 0x198   :  { %1099 = vsyncpa [#allocation4], 1 }
 0x199   :  { %1101 = vsyncpa [#allocation4 + $0x1], 1 }

</bundles_post_ra>
